<compile_context>
chip_gen: v7x
topology: tpu7x:2x2x1
jax: 0.10.0
libtpu: 0.0.40
codegen_flags: <defaults>
</compile_context>

<pallas_src>
import functools

import jax
import jax.numpy as jnp
from jax.experimental import pallas as pl
from jax.experimental.pallas import tpu as pltpu


def _weighted_ce_kernel(pred_ref, target_ref, wparam_ref, loss_ref, acc_ref, *, n_rows):
    """Accumulate weighted-NLL numerator / denominator over row tiles."""
    i = pl.program_id(0)

    @pl.when(i == 0)
    def _init():
        acc_ref[0] = jnp.float32(0.0)
        acc_ref[1] = jnp.float32(0.0)

    tn, c = pred_ref.shape

    # Valid-row mask for the ragged last tile (out-of-bounds rows of a partial block hold garbage).
    rows = i * tn + jax.lax.broadcasted_iota(jnp.int32, (tn, 1), 0)      # (TN, 1) global row idx
    row_valid = rows < n_rows                                            # (TN, 1) bool

    # Zero garbage rows BEFORE exp/log so stale VMEM (possibly NaN/Inf bit patterns) can't pollute lse.
    x = jnp.where(row_valid, pred_ref[...].astype(jnp.float32), 0.0)     # (TN, C) f32
    tgt = target_ref[...]                                                # (TN, 1) int32
    # Fused class-weight transform: 1 / (2 * exp(p)) == 0.5 * exp(-p)    (EUP slot, otherwise idle)
    w = 0.5 * jnp.exp(-wparam_ref[...].astype(jnp.float32))              # (1, C)

    # Numerically stable log-sum-exp along the class dim.
    m = jnp.max(x, axis=-1, keepdims=True)                               # (TN, 1)
    lse = m + jnp.log(jnp.sum(jnp.exp(x - m), axis=-1, keepdims=True))   # (TN, 1)

    # One-hot select of the target column; invalid rows and out-of-range targets select nothing,
    # contributing 0 to both numerator and denominator.
    classes = jax.lax.broadcasted_iota(jnp.int32, (tn, c), 1)            # (TN, C)
    onehot = (classes == tgt) & row_valid                                # (TN, C) bool

    x_t = jnp.sum(jnp.where(onehot, x, 0.0), axis=-1, keepdims=True)     # (TN, 1) logit at target
    w_t = jnp.sum(jnp.where(onehot, w, 0.0), axis=-1, keepdims=True)     # (TN, 1) weight at target

    acc_ref[0] += jnp.sum(w_t * (lse - x_t))   # weighted NLL numerator (partial)
    acc_ref[1] += jnp.sum(w_t)                 # sum of per-sample weights (partial)

    @pl.when(i == pl.num_programs(0) - 1)
    def _finalize():
        # NOTE: NaN (0/0) if every target is out of range or all class weights are 0,
        # matching PyTorch's behavior for a zero weight sum.
        loss_ref[0, 0] = acc_ref[0] / acc_ref[1]


def _round_up(x, m):
    return ((x + m - 1) // m) * m


def na_classifier_v0_loss(pred, target, weight_param, *, block_rows=None):
    """JAX/Pallas equivalent of NaClassifierV0.forward.

    pred:         (N, C) logits (f32 or bf16 -- passed through in native dtype)
    target:       (N,)   integer class indices
    weight_param: (C,)   learnable parameter (== [na_alpha] * n_classes at init)
    """
    n, c = pred.shape
    itemsize = jnp.dtype(pred.dtype).itemsize

    if block_rows is None:
        # ~4 MiB per pred tile (x2 for double buffering) keeps us well inside v7x's 64 MiB VMEM,
        # while being large enough to amortize the ~0.35 us per-grid-step overhead.
        budget = 4 * 1024 * 1024
        block_rows = max(8, min(4096, budget // max(1, c * itemsize)))

    tn = min(_round_up(n, 8), _round_up(block_rows, 8))
    grid = (pl.cdiv(n, tn),)   # ragged last tile is masked in-kernel (no host-side padding copy)

    target2d = target.astype(jnp.int32).reshape(n, 1)
    wparam2d = weight_param.astype(jnp.float32).reshape(1, c)

    kernel = functools.partial(_weighted_ce_kernel, n_rows=n)

    # TODO(synk): on v7x, optionally add a leading size-2 "parallel" axis over row halves
    # (two partial (num, den) outputs combined in the wrapper) to use both TensorCores for huge N.
    loss = pl.pallas_call(
        kernel,
        out_shape=jax.ShapeDtypeStruct((1, 1), jnp.float32),
        grid_spec=pltpu.PrefetchScalarGridSpec(
            num_scalar_prefetch=0,
            grid=grid,
            in_specs=[
                pl.BlockSpec((tn, c), lambda i: (i, 0)),   # pred tile (native dtype, cast in-kernel)
                pl.BlockSpec((tn, 1), lambda i: (i, 0)),   # target tile
                pl.BlockSpec((1, c), lambda i: (0, 0)),    # raw weight param (transform fused in-kernel)
            ],
            out_specs=pl.BlockSpec(memory_space=pltpu.MemorySpace.SMEM),
            scratch_shapes=[pltpu.SMEM((2,), jnp.float32)],   # persistent (num, den) accumulator
        ),
        compiler_params=pltpu.CompilerParams(
            dimension_semantics=("arbitrary",),   # reduction axis
        ),
    )(pred, target2d, wparam2d)
    return loss[0, 0]


def _reference_loss(pred, target, weight_param):
    """Pure-JAX reference of F.cross_entropy(pred, target, weight=1/(2*exp(w)))."""
    w = 1.0 / (2.0 * jnp.exp(weight_param.astype(jnp.float32)))
    logp = jax.nn.log_softmax(pred.astype(jnp.float32), axis=-1)
    logp_t = jnp.take_along_axis(logp, target[:, None].astype(jnp.int32), axis=-1)[:, 0]
    w_t = w[target]
    return jnp.sum(-w_t * logp_t) / jnp.sum(w_t)


if __name__ == "__main__":
    key = jax.random.PRNGKey(0)
    k1, k2, k3, k4, k5, k6 = jax.random.split(key, 6)

    NA_ALPHA = 0.5
    C = 32  # n_classes
    weight_param = jnp.full((C,), NA_ALPHA, dtype=jnp.float32)  # deterministic init: [na_alpha] * C

    # --- small single-block case (batch=8) ---
    N1 = 8
    pred1 = jax.random.normal(k1, (N1, C), dtype=jnp.float32)
    target1 = jax.random.randint(k2, (N1,), 0, C, dtype=jnp.int32)

    loss1 = na_classifier_v0_loss(pred1, target1, weight_param)
    jax.block_until_ready(loss1)
    ref1 = _reference_loss(pred1, target1, weight_param)
    assert jnp.allclose(loss1, ref1, atol=1e-5, rtol=1e-5), (loss1, ref1)

    # --- multi-block + ragged last tile exercising the in-kernel row mask (batch=200, tile=64) ---
    N2 = 200
    pred2 = jax.random.normal(k3, (N2, C), dtype=jnp.float32)
    target2 = jax.random.randint(k4, (N2,), 0, C, dtype=jnp.int32)

    loss2 = na_classifier_v0_loss(pred2, target2, weight_param, block_rows=64)
    jax.block_until_ready(loss2)
    ref2 = _reference_loss(pred2, target2, weight_param)
    assert jnp.allclose(loss2, ref2, atol=1e-5, rtol=1e-5), (loss2, ref2)

    # --- bf16 logits, ragged multi-block (batch=129, tile=64) ---
    N3 = 129
    pred3 = jax.random.normal(k5, (N3, C), dtype=jnp.float32).astype(jnp.bfloat16)
    target3 = jax.random.randint(k6, (N3,), 0, C, dtype=jnp.int32)

    loss3 = na_classifier_v0_loss(pred3, target3, weight_param, block_rows=64)
    jax.block_until_ready(loss3)
    ref3 = _reference_loss(pred3, target3, weight_param)
    assert jnp.allclose(loss3, ref3, atol=1e-5, rtol=1e-5), (loss3, ref3)

    print("KERNEL_OK")
</pallas_src>

<mosaic_0001>
module attributes {stable_mosaic.version = 11 : i64} {
  func.func @_weighted_ce_kernel(%arg0: i32, %arg1: memref<8x32xf32, #tpu.memory_space<vmem>>, %arg2: memref<8x1xi32, #tpu.memory_space<vmem>>, %arg3: memref<1x32xf32, #tpu.memory_space<vmem>>, %arg4: memref<1x1xf32, #tpu.memory_space<smem>>, %arg5: memref<2xf32, #tpu.memory_space<smem>>) attributes {dimension_semantics = [#tpu.dimension_semantics<arbitrary>], iteration_bounds = array<i64: 1>, scalar_prefetch = 0 : i64, scratch_operands = 1 : i64, tpu.core_type = #tpu.core_type<tc>, window_params = [{transform_indices = @transform_0, window_bounds = array<i64: 8, 32>}, {transform_indices = @transform_1, window_bounds = array<i64: 8, 1>}, {pipeline_mode = #tpu.pipeline_mode<synchronous>, transform_indices = @transform_2, window_bounds = array<i64: 1, 32>}, {transform_indices = @transform_3, window_bounds = array<i64: 1, 1>}]} {
    %c0_i32 = arith.constant 0 : i32
    %0 = arith.cmpi eq, %arg0, %c0_i32 : i32
    %1 = arith.extui %0 : i1 to i32
    %c0_i32_0 = arith.constant 0 : i32
    %2 = arith.cmpi ne, %1, %c0_i32_0 : i32
    scf.if %2 {
      %cst_22 = arith.constant 0.000000e+00 : f32
      %c0_23 = arith.constant 0 : index
      %64 = memref.load %arg5[%c0_23] : memref<2xf32, #tpu.memory_space<smem>>
      memref.store %cst_22, %arg5[%c0_23] : memref<2xf32, #tpu.memory_space<smem>>
      %cst_24 = arith.constant 0.000000e+00 : f32
      %c1_25 = arith.constant 1 : index
      %65 = memref.load %arg5[%c1_25] : memref<2xf32, #tpu.memory_space<smem>>
      memref.store %cst_24, %arg5[%c1_25] : memref<2xf32, #tpu.memory_space<smem>>
    } else {
    }
    %c8_i32 = arith.constant 8 : i32
    %3 = arith.muli %arg0, %c8_i32 : i32
    %4 = tpu.iota {dimensions = array<i32: 0>} : vector<8x1xi32>
    %5 = vector.broadcast %3 : i32 to vector<8x1xi32>
    %6 = arith.addi %5, %4 : vector<8x1xi32>
    %c8_i32_1 = arith.constant 8 : i32
    %7 = vector.broadcast %c8_i32_1 : i32 to vector<8x1xi32>
    %8 = arith.cmpi slt, %6, %7 : vector<8x1xi32>
    %c0 = arith.constant 0 : index
    %c0_2 = arith.constant 0 : index
    %9 = vector.load %arg1[%c0, %c0_2] : memref<8x32xf32, #tpu.memory_space<vmem>>, vector<8x32xf32>
    %cst = arith.constant 0.000000e+00 : f32
    %10 = vector.shape_cast %8 : vector<8x1xi1> to vector<8x1xi1>
    %11 = vector.broadcast %10 : vector<8x1xi1> to vector<8x32xi1>
    %12 = vector.broadcast %cst : f32 to vector<8x32xf32>
    %13 = arith.select %11, %9, %12 : vector<8x32xi1>, vector<8x32xf32>
    %c0_3 = arith.constant 0 : index
    %c0_4 = arith.constant 0 : index
    %14 = vector.load %arg2[%c0_3, %c0_4] : memref<8x1xi32, #tpu.memory_space<vmem>>, vector<8x1xi32>
    %c0_5 = arith.constant 0 : index
    %c0_6 = arith.constant 0 : index
    %15 = vector.load %arg3[%c0_5, %c0_6] : memref<1x32xf32, #tpu.memory_space<vmem>>, vector<1x32xf32>
    %cst_7 = arith.constant 0.000000e+00 : f32
    %16 = vector.broadcast %cst_7 : f32 to vector<1x32xf32>
    %17 = arith.subf %16, %15 : vector<1x32xf32>
    %18 = math.exp %17 : vector<1x32xf32>
    %cst_8 = arith.constant 5.000000e-01 : f32
    %19 = vector.broadcast %cst_8 : f32 to vector<1x32xf32>
    %20 = arith.mulf %19, %18 : vector<1x32xf32>
    %cst_9 = arith.constant dense<0xFF800000> : vector<8xf32>
    %21 = vector.multi_reduction <maximumf>, %13, %cst_9 [1] : vector<8x32xf32> to vector<8xf32>
    %22 = vector.shape_cast %21 : vector<8xf32> to vector<8x1xf32>
    %23 = vector.broadcast %22 : vector<8x1xf32> to vector<8x32xf32>
    %24 = arith.subf %13, %23 : vector<8x32xf32>
    %25 = math.exp %24 : vector<8x32xf32>
    %cst_10 = arith.constant dense<0.000000e+00> : vector<8xf32>
    %26 = vector.multi_reduction <add>, %25, %cst_10 [1] : vector<8x32xf32> to vector<8xf32>
    %27 = vector.shape_cast %26 : vector<8xf32> to vector<8x1xf32>
    %28 = math.log %27 : vector<8x1xf32>
    %29 = arith.addf %22, %28 : vector<8x1xf32>
    %30 = tpu.iota {dimensions = array<i32: 1>} : vector<8x32xi32>
    %31 = vector.broadcast %14 : vector<8x1xi32> to vector<8x32xi32>
    %32 = arith.cmpi eq, %30, %31 : vector<8x32xi32>
    %33 = vector.broadcast %8 : vector<8x1xi1> to vector<8x32xi1>
    %34 = arith.andi %32, %33 : vector<8x32xi1>
    %cst_11 = arith.constant 0.000000e+00 : f32
    %35 = vector.broadcast %cst_11 : f32 to vector<8x32xf32>
    %36 = arith.select %34, %13, %35 : vector<8x32xi1>, vector<8x32xf32>
    %cst_12 = arith.constant dense<0.000000e+00> : vector<8xf32>
    %37 = vector.multi_reduction <add>, %36, %cst_12 [1] : vector<8x32xf32> to vector<8xf32>
    %38 = vector.shape_cast %37 : vector<8xf32> to vector<8x1xf32>
    %cst_13 = arith.constant 0.000000e+00 : f32
    %39 = vector.shape_cast %20 : vector<1x32xf32> to vector<1x32xf32>
    %40 = vector.broadcast %39 : vector<1x32xf32> to vector<8x32xf32>
    %41 = vector.broadcast %cst_13 : f32 to vector<8x32xf32>
    %42 = arith.select %34, %40, %41 : vector<8x32xi1>, vector<8x32xf32>
    %cst_14 = arith.constant dense<0.000000e+00> : vector<8xf32>
    %43 = vector.multi_reduction <add>, %42, %cst_14 [1] : vector<8x32xf32> to vector<8xf32>
    %44 = vector.shape_cast %43 : vector<8xf32> to vector<8x1xf32>
    %c0_15 = arith.constant 0 : index
    %45 = memref.load %arg5[%c0_15] : memref<2xf32, #tpu.memory_space<smem>>
    %46 = arith.subf %29, %38 : vector<8x1xf32>
    %47 = arith.mulf %44, %46 : vector<8x1xf32>
    %48 = vector.shape_cast %47 : vector<8x1xf32> to vector<1x8x1xf32>
    %cst_16 = arith.constant dense<0.000000e+00> : vector<1xf32>
    %49 = vector.multi_reduction <add>, %48, %cst_16 [1, 2] : vector<1x8x1xf32> to vector<1xf32>
    %50 = vector.shape_cast %49 : vector<1xf32> to vector<1x1x1xf32>
    %51 = vector.extract %50[0, 0, 0] : f32 from vector<1x1x1xf32>
    %52 = arith.addf %45, %51 : f32
    %c0_17 = arith.constant 0 : index
    %53 = memref.load %arg5[%c0_17] : memref<2xf32, #tpu.memory_space<smem>>
    memref.store %52, %arg5[%c0_17] : memref<2xf32, #tpu.memory_space<smem>>
    %c1 = arith.constant 1 : index
    %54 = memref.load %arg5[%c1] : memref<2xf32, #tpu.memory_space<smem>>
    %55 = vector.shape_cast %44 : vector<8x1xf32> to vector<1x8x1xf32>
    %cst_18 = arith.constant dense<0.000000e+00> : vector<1xf32>
    %56 = vector.multi_reduction <add>, %55, %cst_18 [1, 2] : vector<1x8x1xf32> to vector<1xf32>
    %57 = vector.shape_cast %56 : vector<1xf32> to vector<1x1x1xf32>
    %58 = vector.extract %57[0, 0, 0] : f32 from vector<1x1x1xf32>
    %59 = arith.addf %54, %58 : f32
    %c1_19 = arith.constant 1 : index
    %60 = memref.load %arg5[%c1_19] : memref<2xf32, #tpu.memory_space<smem>>
    memref.store %59, %arg5[%c1_19] : memref<2xf32, #tpu.memory_space<smem>>
    %c0_i32_20 = arith.constant 0 : i32
    %61 = arith.cmpi eq, %arg0, %c0_i32_20 : i32
    %62 = arith.extui %61 : i1 to i32
    %c0_i32_21 = arith.constant 0 : i32
    %63 = arith.cmpi ne, %62, %c0_i32_21 : i32
    scf.if %63 {
      %c0_22 = arith.constant 0 : index
      %64 = memref.load %arg5[%c0_22] : memref<2xf32, #tpu.memory_space<smem>>
      %c1_23 = arith.constant 1 : index
      %65 = memref.load %arg5[%c1_23] : memref<2xf32, #tpu.memory_space<smem>>
      %66 = arith.divf %64, %65 : f32
      %c0_24 = arith.constant 0 : index
      %c0_25 = arith.constant 0 : index
      %67 = memref.load %arg4[%c0_24, %c0_25] : memref<1x1xf32, #tpu.memory_space<smem>>
      memref.store %66, %arg4[%c0_24, %c0_25] : memref<1x1xf32, #tpu.memory_space<smem>>
    } else {
    }
    return
  }
  func.func @transform_0(%arg0: i32) -> (i32, i32) {
    %c0_i32 = arith.constant 0 : i32
    %c0_i32_0 = arith.constant 0 : i32
    return %arg0, %c0_i32 : i32, i32
  }
  func.func @transform_1(%arg0: i32) -> (i32, i32) {
    %c0_i32 = arith.constant 0 : i32
    %c0_i32_0 = arith.constant 0 : i32
    return %arg0, %c0_i32 : i32, i32
  }
  func.func @transform_2(%arg0: i32) -> (i32, i32) {
    %c0_i32 = arith.constant 0 : i32
    %c0_i32_0 = arith.constant 0 : i32
    %c0_i32_1 = arith.constant 0 : i32
    return %c0_i32, %c0_i32_0 : i32, i32
  }
  func.func @transform_3(%arg0: i32) -> (i32, i32) {
    %c0_i32 = arith.constant 0 : i32
    %c0_i32_0 = arith.constant 0 : i32
    %c0_i32_1 = arith.constant 0 : i32
    return %c0_i32, %c0_i32_0 : i32, i32
  }
}

</mosaic_0001>

<bundles_post_ra>
// kernel: tpu_custom_call.1
= control target key start
LH: loop header
LB: loop body
LE: loop exit
PB: predicated region body
PF: predicated region fallthrough
CT: control target
= control target key end

     0   :  { %vm39_vm0 = vcmask 261120   ;;  %s206_s0 = inlined_call_operand.vmem [shape: f32[8,32], index: 0, kind: input, shape index: {}]   ;;  %s207_s1 = inlined_call_operand.vmem [shape: s32[8,1], index: 1, kind: input, shape index: {}]   ;;  %s208_s2 = inlined_call_operand.vmem [shape: f32[1,32], index: 2, kind: input, shape index: {}]   ;;  %s209_s3 = inlined_call_operand.hbm [shape: f32[1,1], index: 3, kind: output, shape index: {}]  }
   0x1   :  { %v29_v0 = vld [vmem:[%s206_s0] sm:$0xff] }
   0x2   :  { %8 = vsyncpa [#allocation4], 0  ;;  %v40_v1 = vsel %vm39_vm0, %v29_v0, -inf  ;;  %v159_v2 = vmov 0   ;;  %v33_v3 = vld [vmem:[%s207_s1] sm:$0xff]  ;;  %v52_v10 = vlaneseq  ;;  %vm76_vm2 = vcmask 7168  }
   0x3   :  { %138 = vset.pattern.permute.xlu0 %v159_v2  ;;  %v34_v4 = vld [vmem:[%s208_s2] sm:$0x1]  ;;  %s147_s21 = scalar_lea.hbm %s209_s3, 16 }
   0x4   :  { %41 = vmax.xlane.f32.xlu0 %v40_v1  ;;  %v35_v5 = vsub.f32 0.0, %v34_v4  ;;  %v65_v11 = vshrl.u32 %v52_v10, 7  ;;  %v53_v13 = vand.u32 127, %v52_v10  ;;  %p148_p0 = scmp.ne.s32.totalorder %s209_s3, %s147_s21  ;;  %p151_p1 = scmp.lt.u32.totalorder %s147_s21, %s209_s3 }
   0x6   :  { %v36_v6 = vmul.f32 1.442695, %v35_v5  ;;  %v66_v16 = vsub.s32 0, %v65_v11  ;;  %p153_p2 = pnand %p151_p1, %p148_p0 }
   0x8   :  { %139 = vpow2.f32 %v36_v6 }
  0x12   :  { %v140_v12 = vpop.eup %139 }
  0x13   :  { %v38_v15 = vmul.f32 0.5, %v140_v12 }
  0x15   :  { %v67_v19 = vrot.slane %v38_v15, %v66_v16 }
  0x1a   :  { %55 = vperm.xlu0 %138, %v33_v3  }
  0x91   :  { %v42_v7 = vpop.xlane.xlu0 %41 }
  0x92   :  { %v43_v8 = vsub.f32 %v29_v0, %v42_v7 }
  0x94   :  { %v44_v9 = vmul.f32 1.442695, %v43_v8 }
  0x96   :  { %141 = vpow2.f32 %v44_v9 }
  0x99   :  { %v56_v14 = vpop.permute.xlu0 %55 }
  0x9a   :  { %vm57_vm1 = vcmp.eq.s32.totalorder %v53_v13, %v56_v14 }
  0x9b   :  { %v59_v18 = vsel %vm57_vm1, %v29_v0, 0.0  ;;  %v69_v22 = vsel %vm57_vm1, %v67_v19, 0.0 }
  0x9c   :  { %v60_v21 = vsel %vm39_vm0, %v59_v18, 0.0  ;;  %v70_v23 = vsel %vm39_vm0, %v69_v22, 0.0 }
  0xa0   :  { %v142_v17 = vpop.eup %141 }
  0xa1   :  { %v46_v20 = vsel %vm39_vm0, %v142_v17, 0.0 }
  0xa2   :  { %47 = vadd.xlane.f32.xlu1 %v46_v20 }
  0xa6   :  { %61 = vadd.xlane.f32.xlu1 %v60_v21 }
  0xaa   :  { %71 = vadd.xlane.f32.xlu1 %v70_v23 }
 0x12f   :  { %v48_v24 = vpop.xlane.xlu1 %47 }
 0x130   :  { %143 = vlog2.f32 %v48_v24 }
 0x133   :  { %v62_v26 = vpop.xlane.xlu1 %61 }
 0x137   :  { %v72_v30 = vpop.xlane.xlu1 %71 }
 0x138   :  { %v91_v33 = vsel %vm76_vm2, %v72_v30, 0.0 }
 0x13a   :  { %v144_v25 = vpop.eup %143 }
 0x13b   :  { %v50_v27 = vmul.f32 0.6931472, %v144_v25 }
 0x13d   :  { %v51_v28 = vadd.f32 %v50_v27, %v42_v7 }
 0x13f   :  { %v74_v29 = vsub.f32 %v51_v28, %v62_v26 }
 0x141   :  { %v75_v31 = vmul.f32 %v74_v29, %v72_v30 }
 0x143   :  { %v77_v32 = vsel %vm76_vm2, %v75_v31, 0.0 }
 0x144   :  { %78 = vadd.xlane.f32.xlu1 %v77_v32 }
 0x148   :  { %92 = vadd.xlane.f32.xlu1 %v91_v33 }
 0x1d1   :  { %v79_v34 = vpop.xlane.xlu1 %78 }
 0x1d2   :  { %v80_v35 = vrot.slane %v79_v34, 4 }
 0x1d4   :  { %v81_v36 = vadd.f32 %v80_v35, %v79_v34 }
 0x1d5   :  { %v93_v37 = vpop.xlane.xlu1 %92 }
 0x1d6   :  { %v82_v38 = vrot.slane %v81_v36, 2  ;;  %v94_v39 = vrot.slane %v93_v37, 4 }
 0x1d8   :  { %v95_v40 = vadd.f32 %v94_v39, %v93_v37  ;;  %v83_v41 = vadd.f32 %v82_v38, %v81_v36 }
 0x1da   :  { %v96_v42 = vrot.slane %v95_v40, 2  ;;  %v84_v43 = vrot.slane %v83_v41, 1 }
 0x1dc   :  { %v97_v44 = vadd.f32 %v96_v42, %v95_v40  ;;  %v85_v45 = vadd.f32 %v84_v43, %v83_v41 }
 0x1de   :  { %130 = vpush %v85_v45  ;;  %v98_v46 = vrot.slane %v97_v44, 1 }
 0x1e0   :  { %v99_v47 = vadd.f32 %v98_v46, %v97_v44 }
 0x1e2   :  { %132 = vpush %v99_v47 }
 0x20f   :  { %s131_s0 = spop %130 }
 0x213   :  { %s133_s1 = spop %132 }
 0x214   :  { %v109_v48 = vstv %s133_s1 }
 0x215   :  { %145 = vrcp.f32 %v109_v48 }
 0x21f   :  { %v146_v49 = vpop.eup %145 }
 0x220   :  { %134 = vpush %v146_v49 }
 0x251   :  { %s135_s2 = spop %134 }
 0x252   :  { %s112_s18 = smul.f32 %s135_s2, %s131_s0 }
 0x254   :  { %114 = sst [smem:[#allocation3]] %s112_s18 }
 0x255   :  { %156 = shalt.err (!%p153_p2)
}
 0x256   :  { %s160_s26 = smov [#allocation3]  }
 0x257   :  { %122 = dma.smem_to_hbm %s160_s26, 16, %s209_s3, [#allocation4]  }
 0x258   :  { %157 = dma.done.wait [#allocation4], 16  }
 0x259   :  { %158 = vsyncadd [#allocation4], 4294967280 }
 0x25a   :  { %126 = sfence }
 0x25b   :  { %127 = vsyncpa [#allocation4], 1 }

</bundles_post_ra>
